<compile_context>
chip_gen: v6e
topology: v6e:2x2x1
jax: 0.10.0
libtpu: 0.0.40
codegen_flags: <defaults>
</compile_context>

<pallas_src>
import functools

import jax
import jax.numpy as jnp
from jax.experimental import pallas as pl
from jax.experimental.pallas import tpu as pltpu

# ----------------------------- configuration -------------------------------
S = 8               # DATA.input_size[0]  (sequence length)
F_IN = 4 * 8        # f_input_size = DATA.input_size[1] * DATA.input_size[2]
NUM_CLASSES = 5     # DATA.num_classes
EMBED = 16          # MODEL.embed_size
CONV_DIM = 32       # MODEL.conv_dim
DEPTH = 2           # MODEL.depth
EXPAND = 2          # MODEL.expand_ratio
E = CONV_DIM * EXPAND
BATCH = 2
BN_EPS = 1e-5
ECA_K = 3
IN_DIMS = [EMBED] + [CONV_DIM] * (DEPTH - 1)

MAX_ROWS_PER_TILE = 512   # (sample, seq) rows handled per grid step


# ------------------------------ tiling plan ---------------------------------
def _round8(n):
    return -(-n // 8) * 8


def _plan(batch):
    """Choose samples-per-grid-step (bt). Small B -> one step; large B ->
    8*k-sample tiles so grid steps stay (8,128)-aligned and 'parallel'."""
    if batch * S <= MAX_ROWS_PER_TILE:
        bt = batch
    else:
        bt = max(8, ((MAX_ROWS_PER_TILE // S) // 8) * 8)
    n_tiles = -(-batch // bt)
    return bt, n_tiles, n_tiles * bt


def _build_layout(bt):
    """Row layout of the single packed parameter slab (width padded to 128)."""
    r_rows = bt * S
    entries = [("win_T", F_IN, EMBED)]
    for i, cin in enumerate(IN_DIMS):
        entries += [
            (f"b{i}_wl1_T", cin, E), (f"b{i}_bl1", 1, E),
            (f"b{i}_wc_T", E, E), (f"b{i}_eband_s", E, E),
            (f"b{i}_wl2f_T", E, CONV_DIM), (f"b{i}_bl2f", 1, CONV_DIM),
        ]
    entries += [
        ("vtop", CONV_DIM, 1),          # top_linear + channel-mean folded
        ("whead", r_rows, NUM_CLASSES),  # outlinear.weight^T tiled per sample
        ("bout", 1, NUM_CLASSES),
        ("sel", bt, r_rows),             # one-hot row->sample selector
        ("expand", r_rows, bt),          # its transpose (gate broadcast)
    ]
    layout, off, width = {}, 0, 0
    for name, r, c in entries:
        layout[name] = (off, r, c)
        off += _round8(r)
        width = max(width, c)
    width = -(-width // 128) * 128
    return layout, _round8(off), width


# ------------------------------- kernel ------------------------------------
def model_kernel(x_ref, slab_ref, out_ref, *, layout):
    def W(name):
        r0, nr, nc = layout[name]
        return slab_ref[r0:r0 + nr, 0:nc]

    sel = W("sel")          # (BT, R): 1 where row belongs to sample
    expand = W("expand")    # (R, BT): broadcast per-sample values back to rows

    # inlinear (bias=False): (R, F_IN) @ (F_IN, EMBED)
    h = jnp.dot(x_ref[...], W("win_T"), preferred_element_type=jnp.float32)

    for i, cin in enumerate(IN_DIMS):
        # in_linear + ReLU                              (R, cin) -> (R, E)
        z = jnp.dot(h, W(f"b{i}_wl1_T"),
                    preferred_element_type=jnp.float32) + W(f"b{i}_bl1")
        z = jnp.maximum(z, 0.0)
        # Conv1d(E, E, k=1, 'valid', bias=False) == pointwise mix, + ReLU
        z = jnp.dot(z, W(f"b{i}_wc_T"), preferred_element_type=jnp.float32)
        z = jnp.maximum(z, 0.0)
        # ECA: per-sample mean over seq (sel @ z; the 1/S is folded into the
        # band), 3-tap channel conv as a banded ExE matmul, sigmoid gate
        # broadcast back to all rows of the sample.
        y = jnp.dot(sel, z, preferred_element_type=jnp.float32)        # (BT, E)
        g = jax.nn.sigmoid(jnp.dot(y, W(f"b{i}_eband_s"),
                                   preferred_element_type=jnp.float32))
        z = z * jnp.dot(expand, g, preferred_element_type=jnp.float32)
        # out_linear with eval-BatchNorm folded into its weight/bias.
        z = jnp.dot(z, W(f"b{i}_wl2f_T"),
                    preferred_element_type=jnp.float32) + W(f"b{i}_bl2f")
        h = z + h if cin == CONV_DIM else z   # drop_path == identity at eval

    # top_linear(bias=False) + mean over channels == single matvec with vtop.
    m = jnp.dot(h, W("vtop"), preferred_element_type=jnp.float32)      # (R, 1)
    # outlinear over the seq axis for every sample at once; lane-dense rows.
    out = jnp.dot(sel, m * W("whead"),
                  preferred_element_type=jnp.float32)                  # (BT, K)
    out_ref[...] = out + W("bout")


# ------------------------------- wrapper ------------------------------------
def build_model_forward(batch):
    bt, n_tiles, batch_pad = _plan(batch)
    layout, slab_rows, slab_w = _build_layout(bt)
    rows_per_tile = bt * S
    kernel = functools.partial(model_kernel, layout=layout)

    @jax.jit
    def forward(x, slab):
        xf = x.reshape(batch * S, F_IN)
        if batch_pad != batch:
            xf = jnp.pad(xf, ((0, (batch_pad - batch) * S), (0, 0)))
        out = pl.pallas_call(
            kernel,
            out_shape=jax.ShapeDtypeStruct((batch_pad, NUM_CLASSES), jnp.float32),
            grid=(n_tiles,),
            in_specs=[
                pl.BlockSpec((rows_per_tile, F_IN), lambda i: (i, 0)),
                pl.BlockSpec((slab_rows, slab_w), lambda i: (0, 0)),
            ],
            out_specs=pl.BlockSpec((bt, NUM_CLASSES), lambda i: (i, 0)),
            compiler_params=pltpu.CompilerParams(
                dimension_semantics=("parallel",)),
        )(xf, slab)
        return out[:batch]

    return forward


def pack_params(params, batch):
    """Fold (BN -> out_linear, top_linear+mean -> vtop, 1/S -> ECA band) and
    pack everything into one contiguous f32 slab (2 DMA windows per call)."""
    bt, _, _ = _plan(batch)
    layout, slab_rows, slab_w = _build_layout(bt)
    r_rows = bt * S

    vals = {"win_T": params["win_T"]}
    for i in range(DEPTH):
        scale = params[f"b{i}_bnscale"].reshape(E)
        shift = params[f"b{i}_bnshift"].reshape(E)
        wl2 = params[f"b{i}_wl2_T"]
        vals[f"b{i}_wl1_T"] = params[f"b{i}_wl1_T"]
        vals[f"b{i}_bl1"] = params[f"b{i}_bl1"]
        vals[f"b{i}_wc_T"] = params[f"b{i}_wc_T"]
        vals[f"b{i}_eband_s"] = params[f"b{i}_eband"] / float(S)
        vals[f"b{i}_wl2f_T"] = scale[:, None] * wl2
        vals[f"b{i}_bl2f"] = shift[None, :] @ wl2 + params[f"b{i}_bl2"]
    vals["vtop"] = params["wtop_T"].mean(axis=1, keepdims=True)        # (C, 1)
    vals["whead"] = jnp.tile(params["wout"].T, (bt, 1))                # (R, K)
    vals["bout"] = params["bout"].reshape(1, NUM_CLASSES)
    seg = jnp.arange(r_rows) // S
    sel = (seg[None, :] == jnp.arange(bt)[:, None]).astype(jnp.float32)
    vals["sel"] = sel
    vals["expand"] = sel.T

    slab = jnp.zeros((slab_rows, slab_w), jnp.float32)
    for name, (r0, nr, nc) in layout.items():
        v = jnp.asarray(vals[name], jnp.float32)
        assert v.shape == (nr, nc), (name, v.shape, (nr, nc))
        slab = slab.at[r0:r0 + nr, 0:nc].set(v)
    return slab


# --------------------------- parameter setup --------------------------------
def _eca_band(w3, n):
    # Conv1d(1, 1, 3, padding=1, bias=False) over a length-n channel vector,
    # written as an (n, n) banded matrix: out = y_row @ M.
    i = jnp.arange(n)[:, None]
    c = jnp.arange(n)[None, :]
    d = i - c + 1
    valid = (d >= 0) & (d <= ECA_K - 1)
    return jnp.where(valid, w3[jnp.clip(d, 0, ECA_K - 1)], 0.0).astype(jnp.float32)


def init_params(key):
    keys = iter(jax.random.split(key, 32))

    def nrm(shape, scale=0.1):
        return (scale * jax.random.normal(next(keys), shape)).astype(jnp.float32)

    p = {"win_T": nrm((F_IN, EMBED))}                    # inlinear.weight^T
    for i, cin in enumerate(IN_DIMS):
        cout = CONV_DIM
        p[f"b{i}_wl1_T"] = nrm((cin, E))                 # in_linear.weight^T
        p[f"b{i}_bl1"] = nrm((1, E))                     # in_linear.bias
        p[f"b{i}_wc_T"] = nrm((E, E))                    # conv1d.weight[:, :, 0]^T
        p[f"b{i}_eband"] = _eca_band(nrm((ECA_K,), 0.5), E)
        gamma = 1.0 + nrm((E,))
        beta = nrm((E,))
        rmean = nrm((E,))
        rvar = jnp.abs(nrm((E,))) + 1.0
        scale = gamma * jax.lax.rsqrt(rvar + BN_EPS)     # fold eval BatchNorm1d
        p[f"b{i}_bnscale"] = scale.reshape(1, E)
        p[f"b{i}_bnshift"] = (beta - rmean * scale).reshape(1, E)
        p[f"b{i}_wl2_T"] = nrm((E, cout))                # out_linear.weight^T
        p[f"b{i}_bl2"] = nrm((1, cout))                  # out_linear.bias
    p["wtop_T"] = nrm((CONV_DIM, 2 * CONV_DIM))          # top_linear.weight^T
    p["wout"] = nrm((NUM_CLASSES, S))                    # outlinear.weight
    p["bout"] = nrm((NUM_CLASSES, 1))                    # outlinear.bias
    return p


# ---------------------------- pure-JAX reference ----------------------------
def reference(x, p):
    h = x @ p["win_T"]
    for i, cin in enumerate(IN_DIMS):
        res = cin == CONV_DIM
        z = jnp.maximum(h @ p[f"b{i}_wl1_T"] + p[f"b{i}_bl1"], 0.0)
        z = jnp.maximum(z @ p[f"b{i}_wc_T"], 0.0)
        y = jnp.mean(z, axis=1, keepdims=True)
        z = z * jax.nn.sigmoid(y @ p[f"b{i}_eband"])
        z = z * p[f"b{i}_bnscale"] + p[f"b{i}_bnshift"]
        z = z @ p[f"b{i}_wl2_T"] + p[f"b{i}_bl2"]
        h = z + h if res else z
    t = h @ p["wtop_T"]
    m = jnp.mean(t, axis=-1)
    return m @ p["wout"].T + p["bout"].T


# --------------------------------- main --------------------------------------
if __name__ == "__main__":
    key = jax.random.PRNGKey(0)
    kx, kp = jax.random.split(key)
    x = jax.random.normal(kx, (BATCH, S, F_IN), dtype=jnp.float32)
    params = init_params(kp)

    slab = pack_params(params, BATCH)            # one-time parameter packing
    forward = build_model_forward(BATCH)
    out = jax.block_until_ready(forward(x, slab))
    assert out.shape == (BATCH, NUM_CLASSES), out.shape

    ref = reference(x, params)
    if not jnp.allclose(out, ref, atol=2e-3, rtol=2e-3):
        raise AssertionError(
            f"kernel vs reference mismatch, max abs diff {jnp.max(jnp.abs(out - ref))}")
    print("KERNEL_OK")
</pallas_src>

<mosaic_0001>
module attributes {stable_mosaic.version = 11 : i64} {
  func.func @model_kernel(%arg0: i32, %arg1: memref<16x32xf32, #tpu.memory_space<vmem>>, %arg2: memref<576x128xf32, #tpu.memory_space<vmem>>, %arg3: memref<2x5xf32, #tpu.memory_space<vmem>>) attributes {dimension_semantics = [#tpu.dimension_semantics<parallel>], iteration_bounds = array<i64: 1>, scalar_prefetch = 0 : i64, scratch_operands = 0 : i64, tpu.core_type = #tpu.core_type<tc>, window_params = [{transform_indices = @transform_0, window_bounds = array<i64: 16, 32>}, {pipeline_mode = #tpu.pipeline_mode<synchronous>, transform_indices = @transform_1, window_bounds = array<i64: 576, 128>}, {transform_indices = @transform_2, window_bounds = array<i64: 2, 5>}]} {
    %c552 = arith.constant 552 : index
    %c0 = arith.constant 0 : index
    %0 = vector.load %arg2[%c552, %c0] : memref<576x128xf32, #tpu.memory_space<vmem>>, vector<2x16xf32>
    %c560 = arith.constant 560 : index
    %c0_0 = arith.constant 0 : index
    %1 = vector.load %arg2[%c560, %c0_0] : memref<576x128xf32, #tpu.memory_space<vmem>>, vector<16x2xf32>
    %c0_1 = arith.constant 0 : index
    %c0_2 = arith.constant 0 : index
    %2 = vector.load %arg1[%c0_1, %c0_2] : memref<16x32xf32, #tpu.memory_space<vmem>>, vector<16x32xf32>
    %c0_3 = arith.constant 0 : index
    %c0_4 = arith.constant 0 : index
    %3 = vector.load %arg2[%c0_3, %c0_4] : memref<576x128xf32, #tpu.memory_space<vmem>>, vector<32x16xf32>
    %cst = arith.constant dense<0.000000e+00> : vector<16x16xf32>
    %4 = tpu.matmul %2, %3, %cst {dimension_numbers = #tpu.dot_dimension_numbers<[1], [0], [0], [1], [0, 0, 1, 1], [], []>} : vector<16x32xf32>, vector<32x16xf32>, vector<16x16xf32> -> vector<16x16xf32>
    %c32 = arith.constant 32 : index
    %c0_5 = arith.constant 0 : index
    %5 = vector.load %arg2[%c32, %c0_5] : memref<576x128xf32, #tpu.memory_space<vmem>>, vector<16x64xf32>
    %cst_6 = arith.constant dense<0.000000e+00> : vector<16x64xf32>
    %6 = tpu.matmul %4, %5, %cst_6 {dimension_numbers = #tpu.dot_dimension_numbers<[1], [0], [0], [1], [0, 0, 1, 1], [], []>} : vector<16x16xf32>, vector<16x64xf32>, vector<16x64xf32> -> vector<16x64xf32>
    %c48 = arith.constant 48 : index
    %c0_7 = arith.constant 0 : index
    %7 = vector.load %arg2[%c48, %c0_7] : memref<576x128xf32, #tpu.memory_space<vmem>>, vector<1x64xf32>
    %8 = vector.broadcast %7 : vector<1x64xf32> to vector<16x64xf32>
    %9 = arith.addf %6, %8 : vector<16x64xf32>
    %cst_8 = arith.constant 0.000000e+00 : f32
    %10 = vector.broadcast %cst_8 : f32 to vector<16x64xf32>
    %11 = arith.maximumf %9, %10 : vector<16x64xf32>
    %c56 = arith.constant 56 : index
    %c0_9 = arith.constant 0 : index
    %12 = vector.load %arg2[%c56, %c0_9] : memref<576x128xf32, #tpu.memory_space<vmem>>, vector<64x64xf32>
    %cst_10 = arith.constant dense<0.000000e+00> : vector<16x64xf32>
    %13 = tpu.matmul %11, %12, %cst_10 {dimension_numbers = #tpu.dot_dimension_numbers<[1], [0], [0], [1], [0, 0, 1, 1], [], []>} : vector<16x64xf32>, vector<64x64xf32>, vector<16x64xf32> -> vector<16x64xf32>
    %cst_11 = arith.constant 0.000000e+00 : f32
    %14 = vector.broadcast %cst_11 : f32 to vector<16x64xf32>
    %15 = arith.maximumf %13, %14 : vector<16x64xf32>
    %cst_12 = arith.constant dense<0.000000e+00> : vector<2x64xf32>
    %16 = tpu.matmul %0, %15, %cst_12 {dimension_numbers = #tpu.dot_dimension_numbers<[1], [0], [0], [1], [0, 0, 1, 1], [], []>} : vector<2x16xf32>, vector<16x64xf32>, vector<2x64xf32> -> vector<2x64xf32>
    %c120 = arith.constant 120 : index
    %c0_13 = arith.constant 0 : index
    %17 = vector.load %arg2[%c120, %c0_13] : memref<576x128xf32, #tpu.memory_space<vmem>>, vector<64x64xf32>
    %cst_14 = arith.constant dense<0.000000e+00> : vector<2x64xf32>
    %18 = tpu.matmul %16, %17, %cst_14 {dimension_numbers = #tpu.dot_dimension_numbers<[1], [0], [0], [1], [0, 0, 1, 1], [], []>} : vector<2x64xf32>, vector<64x64xf32>, vector<2x64xf32> -> vector<2x64xf32>
    %19 = arith.negf %18 : vector<2x64xf32>
    %20 = math.exp %19 : vector<2x64xf32>
    %cst_15 = arith.constant 1.000000e+00 : f32
    %21 = vector.broadcast %cst_15 : f32 to vector<2x64xf32>
    %22 = arith.addf %21, %20 : vector<2x64xf32>
    %23 = arith.divf %21, %22 : vector<2x64xf32>
    %cst_16 = arith.constant dense<0.000000e+00> : vector<16x64xf32>
    %24 = tpu.matmul %1, %23, %cst_16 {dimension_numbers = #tpu.dot_dimension_numbers<[1], [0], [0], [1], [0, 0, 1, 1], [], []>} : vector<16x2xf32>, vector<2x64xf32>, vector<16x64xf32> -> vector<16x64xf32>
    %25 = arith.mulf %15, %24 : vector<16x64xf32>
    %c184 = arith.constant 184 : index
    %c0_17 = arith.constant 0 : index
    %26 = vector.load %arg2[%c184, %c0_17] : memref<576x128xf32, #tpu.memory_space<vmem>>, vector<64x32xf32>
    %cst_18 = arith.constant dense<0.000000e+00> : vector<16x32xf32>
    %27 = tpu.matmul %25, %26, %cst_18 {dimension_numbers = #tpu.dot_dimension_numbers<[1], [0], [0], [1], [0, 0, 1, 1], [], []>} : vector<16x64xf32>, vector<64x32xf32>, vector<16x32xf32> -> vector<16x32xf32>
    %c248 = arith.constant 248 : index
    %c0_19 = arith.constant 0 : index
    %28 = vector.load %arg2[%c248, %c0_19] : memref<576x128xf32, #tpu.memory_space<vmem>>, vector<1x32xf32>
    %29 = vector.broadcast %28 : vector<1x32xf32> to vector<16x32xf32>
    %30 = arith.addf %27, %29 : vector<16x32xf32>
    %c256 = arith.constant 256 : index
    %c0_20 = arith.constant 0 : index
    %31 = vector.load %arg2[%c256, %c0_20] : memref<576x128xf32, #tpu.memory_space<vmem>>, vector<32x64xf32>
    %cst_21 = arith.constant dense<0.000000e+00> : vector<16x64xf32>
    %32 = tpu.matmul %30, %31, %cst_21 {dimension_numbers = #tpu.dot_dimension_numbers<[1], [0], [0], [1], [0, 0, 1, 1], [], []>} : vector<16x32xf32>, vector<32x64xf32>, vector<16x64xf32> -> vector<16x64xf32>
    %c288 = arith.constant 288 : index
    %c0_22 = arith.constant 0 : index
    %33 = vector.load %arg2[%c288, %c0_22] : memref<576x128xf32, #tpu.memory_space<vmem>>, vector<1x64xf32>
    %34 = vector.broadcast %33 : vector<1x64xf32> to vector<16x64xf32>
    %35 = arith.addf %32, %34 : vector<16x64xf32>
    %cst_23 = arith.constant 0.000000e+00 : f32
    %36 = vector.broadcast %cst_23 : f32 to vector<16x64xf32>
    %37 = arith.maximumf %35, %36 : vector<16x64xf32>
    %c296 = arith.constant 296 : index
    %c0_24 = arith.constant 0 : index
    %38 = vector.load %arg2[%c296, %c0_24] : memref<576x128xf32, #tpu.memory_space<vmem>>, vector<64x64xf32>
    %cst_25 = arith.constant dense<0.000000e+00> : vector<16x64xf32>
    %39 = tpu.matmul %37, %38, %cst_25 {dimension_numbers = #tpu.dot_dimension_numbers<[1], [0], [0], [1], [0, 0, 1, 1], [], []>} : vector<16x64xf32>, vector<64x64xf32>, vector<16x64xf32> -> vector<16x64xf32>
    %cst_26 = arith.constant 0.000000e+00 : f32
    %40 = vector.broadcast %cst_26 : f32 to vector<16x64xf32>
    %41 = arith.maximumf %39, %40 : vector<16x64xf32>
    %cst_27 = arith.constant dense<0.000000e+00> : vector<2x64xf32>
    %42 = tpu.matmul %0, %41, %cst_27 {dimension_numbers = #tpu.dot_dimension_numbers<[1], [0], [0], [1], [0, 0, 1, 1], [], []>} : vector<2x16xf32>, vector<16x64xf32>, vector<2x64xf32> -> vector<2x64xf32>
    %c360 = arith.constant 360 : index
    %c0_28 = arith.constant 0 : index
    %43 = vector.load %arg2[%c360, %c0_28] : memref<576x128xf32, #tpu.memory_space<vmem>>, vector<64x64xf32>
    %cst_29 = arith.constant dense<0.000000e+00> : vector<2x64xf32>
    %44 = tpu.matmul %42, %43, %cst_29 {dimension_numbers = #tpu.dot_dimension_numbers<[1], [0], [0], [1], [0, 0, 1, 1], [], []>} : vector<2x64xf32>, vector<64x64xf32>, vector<2x64xf32> -> vector<2x64xf32>
    %45 = arith.negf %44 : vector<2x64xf32>
    %46 = math.exp %45 : vector<2x64xf32>
    %cst_30 = arith.constant 1.000000e+00 : f32
    %47 = vector.broadcast %cst_30 : f32 to vector<2x64xf32>
    %48 = arith.addf %47, %46 : vector<2x64xf32>
    %49 = arith.divf %47, %48 : vector<2x64xf32>
    %cst_31 = arith.constant dense<0.000000e+00> : vector<16x64xf32>
    %50 = tpu.matmul %1, %49, %cst_31 {dimension_numbers = #tpu.dot_dimension_numbers<[1], [0], [0], [1], [0, 0, 1, 1], [], []>} : vector<16x2xf32>, vector<2x64xf32>, vector<16x64xf32> -> vector<16x64xf32>
    %51 = arith.mulf %41, %50 : vector<16x64xf32>
    %c424 = arith.constant 424 : index
    %c0_32 = arith.constant 0 : index
    %52 = vector.load %arg2[%c424, %c0_32] : memref<576x128xf32, #tpu.memory_space<vmem>>, vector<64x32xf32>
    %cst_33 = arith.constant dense<0.000000e+00> : vector<16x32xf32>
    %53 = tpu.matmul %51, %52, %cst_33 {dimension_numbers = #tpu.dot_dimension_numbers<[1], [0], [0], [1], [0, 0, 1, 1], [], []>} : vector<16x64xf32>, vector<64x32xf32>, vector<16x32xf32> -> vector<16x32xf32>
    %c488 = arith.constant 488 : index
    %c0_34 = arith.constant 0 : index
    %54 = vector.load %arg2[%c488, %c0_34] : memref<576x128xf32, #tpu.memory_space<vmem>>, vector<1x32xf32>
    %55 = vector.broadcast %54 : vector<1x32xf32> to vector<16x32xf32>
    %56 = arith.addf %53, %55 : vector<16x32xf32>
    %57 = arith.addf %56, %30 : vector<16x32xf32>
    %c496 = arith.constant 496 : index
    %c0_35 = arith.constant 0 : index
    %58 = vector.load %arg2[%c496, %c0_35] : memref<576x128xf32, #tpu.memory_space<vmem>>, vector<32x1xf32>
    %cst_36 = arith.constant dense<0.000000e+00> : vector<16x1xf32>
    %59 = tpu.matmul %57, %58, %cst_36 {dimension_numbers = #tpu.dot_dimension_numbers<[1], [0], [0], [1], [0, 0, 1, 1], [], []>} : vector<16x32xf32>, vector<32x1xf32>, vector<16x1xf32> -> vector<16x1xf32>
    %c528 = arith.constant 528 : index
    %c0_37 = arith.constant 0 : index
    %60 = vector.load %arg2[%c528, %c0_37] : memref<576x128xf32, #tpu.memory_space<vmem>>, vector<16x5xf32>
    %61 = vector.broadcast %59 : vector<16x1xf32> to vector<16x5xf32>
    %62 = arith.mulf %61, %60 : vector<16x5xf32>
    %cst_38 = arith.constant dense<0.000000e+00> : vector<2x5xf32>
    %63 = tpu.matmul %0, %62, %cst_38 {dimension_numbers = #tpu.dot_dimension_numbers<[1], [0], [0], [1], [0, 0, 1, 1], [], []>} : vector<2x16xf32>, vector<16x5xf32>, vector<2x5xf32> -> vector<2x5xf32>
    %c544 = arith.constant 544 : index
    %c0_39 = arith.constant 0 : index
    %64 = vector.load %arg2[%c544, %c0_39] : memref<576x128xf32, #tpu.memory_space<vmem>>, vector<1x5xf32>
    %65 = vector.broadcast %64 : vector<1x5xf32> to vector<2x5xf32>
    %66 = arith.addf %63, %65 : vector<2x5xf32>
    %c0_40 = arith.constant 0 : index
    %c0_41 = arith.constant 0 : index
    %67 = vector.load %arg3[%c0_40, %c0_41] : memref<2x5xf32, #tpu.memory_space<vmem>>, vector<2x5xf32>
    tpu.vector_store %arg3[%c0_40, %c0_41], %66 {strides = array<i32>} : memref<2x5xf32, #tpu.memory_space<vmem>>, vector<2x5xf32>,
    return
  }
  func.func @transform_0(%arg0: i32) -> (i32, i32) {
    %c0_i32 = arith.constant 0 : i32
    %c0_i32_0 = arith.constant 0 : i32
    return %arg0, %c0_i32 : i32, i32
  }
  func.func @transform_1(%arg0: i32) -> (i32, i32) {
    %c0_i32 = arith.constant 0 : i32
    %c0_i32_0 = arith.constant 0 : i32
    %c0_i32_1 = arith.constant 0 : i32
    return %c0_i32, %c0_i32_0 : i32, i32
  }
  func.func @transform_2(%arg0: i32) -> (i32, i32) {
    %c0_i32 = arith.constant 0 : i32
    %c0_i32_0 = arith.constant 0 : i32
    return %arg0, %c0_i32 : i32, i32
  }
}

</mosaic_0001>

<bundles_post_ra>
// kernel: forward.1
= control target key start
LH: loop header
LB: loop body
LE: loop exit
PB: predicated region body
PF: predicated region fallthrough
CT: control target
= control target key end

     0   :  { %7 = vsyncpa [#allocation3], 0  ;;  %s1903_s0 = inlined_call_operand.hbm [shape: f32[16,32], index: 0, kind: input, shape index: {}]   ;;  %s1904_s1 = inlined_call_operand.hbm [shape: f32[576,128], index: 1, kind: input, shape index: {}]   ;;  %s1905_s2 = inlined_call_operand.hbm [shape: f32[2,5], index: 2, kind: output, shape index: {}]  }
   0x1   :  { %8 = vsyncpa [#allocation6], 0 }
   0x2   :  { %9 = vsyncpa [#allocation4], 0  ;;  %s1761_s9 = smov [#allocation2]  }
   0x3   :  { %s15_s10 = sshll.u32 %s1761_s9, 4  ;;  %s16_s10 = int_to_ptr.vmem [resolvable:$true] %s15_s10 }
   0x4   :  { %s1703_s11 = scalar_lea.vmem %s16_s10, 256  ;;  %p1708_p1 = scmp.lt.s32.totalorder %s16_s10, %s16_s10 }
   0x5   :  { %p1704_p0 = scmp.ne.s32.totalorder %s16_s10, %s1703_s11  ;;  %p1709_p2 = scmp.lt.s32.totalorder %s1703_s11, %s1703_s11 }
   0x7   :  { %p1710_p3 = por %p1709_p2, %p1708_p1 }
   0x9   :  { %p1711_p4 = pnand %p1710_p3, %p1704_p0 }
   0xb   :  { %1714 = shalt.err (!%p1711_p4)
}
   0xc   :  { %s1762_s12 = smov 128   ;;  %s1763_s13 = smov 8  }
   0xd   :  { %21 = dma.hbm_to_vmem [thread:$0]  %s1903_s0, 256, %s16_s10, [#allocation3], %s1762_s12, %s1762_s12, %s1763_s13  }
   0xe   :  { %s1764_s16 = smov [#allocation5]  }
   0xf   :  { %s27_s17 = sshll.u32 %s1764_s16, 4  ;;  %s28_s17 = int_to_ptr.vmem [resolvable:$true] %s27_s17 }
  0x10   :  { %s1723_s18 = scalar_lea.vmem %s28_s17, 9216  ;;  %p1728_p6 = scmp.lt.s32.totalorder %s28_s17, %s28_s17 }
  0x11   :  { %p1724_p5 = scmp.ne.s32.totalorder %s28_s17, %s1723_s18  ;;  %p1729_p7 = scmp.lt.s32.totalorder %s1723_s18, %s1723_s18 }
  0x13   :  { %p1730_p8 = por %p1729_p7, %p1728_p6 }
  0x15   :  { %p1731_p9 = pnand %p1730_p8, %p1724_p5 }
  0x17   :  { %1734 = shalt.err (!%p1731_p9)
}
  0x18   :  { %33 = dma.hbm_to_vmem [thread:$0]  %s1904_s1, 9216, %s28_s17, [#allocation6], %s1762_s12, %s1762_s12, %s1763_s13  }
  0x19   :  { %1755 = dma.done.wait [#allocation3], 256  }
  0x1a   :  { %1756 = vsyncadd [#allocation3], 4294967040 }
  0x1b   :  { %1757 = dma.done.wait [#allocation6], 9216  }
  0x1c   :  { %1758 = vsyncadd [#allocation6], 4294958080  ;;  %vm49_vm0 = vcmask 261120   ;;  %v48_v0 = vld [vmem:[#allocation5 + $0x18] sm:$0xff]  ;;  %v47_v1 = vld [vmem:[#allocation5 + $0x10] sm:$0xff]  ;;  %vm138_vm1 = vcmask 130048  }
  0x1d   :  { %1493 = vmatprep.subr.mxu0 %v48_v0  ;;  %v43_v2 = vld [vmem:[#allocation2] sm:$0xff]  ;;  %v46_v3 = vld [vmem:[#allocation5 + $0x8] sm:$0xff]  ;;  %v45_v4 = vld [vmem:[#allocation5] sm:$0xff]  ;;  %vm230_vm2 = vcmask 523264   ;;  %v1765_v25 = vmov 0.0   ;;  %vm1766_vm3 = vmmov 0  }
  0x1e   :  { %1494 = vmatpush3.msra.mxu0 %v48_v0  ;;  %1501 = vmatprep.mubr.msk.f32.mxu0 %vm49_vm0, %v43_v2  ;;  %v44_v5 = vld [vmem:[#allocation2 + $0x8] sm:$0xff]  ;;  %v132_v6 = vld [vmem:[#allocation5 + $0x28] sm:$0xff]  ;;  %v131_v7 = vld [vmem:[#allocation5 + $0x20] sm:$0xff]  ;;  %vm474_vm4 = vcmask 15360   ;;  %vm481_vm5 = vcmask 1041408   ;;  %s1768_s0 = smov [#allocation7]  }
  0x1f   :  { %1495 = vmatprep.subr.mxu0 %v47_v1  ;;  %1504 = vmatprep.subr.mxu1 %v132_v6  ;;  %v229_v8 = vld [vmem:[#allocation5 + $0x70] sm:$0xff]  ;;  %v228_v11 = vld [vmem:[#allocation5 + $0x68] sm:$0xff]  ;;  %v227_v12 = vld [vmem:[#allocation5 + $0x60] sm:$0xff]  ;;  %s1354_s1 = sshll.u32 %s1768_s0, 4  ;;  %vm1346_vm6 = vcmask 33792   ;;  %s1355_s1 = int_to_ptr.vmem [resolvable:$true] %s1354_s1 }
  0x20   :  { %1496 = vmatpush3.msra.mxu0 %v47_v1  ;;  %1505 = vmatpush3.msra.mxu1 %v132_v6  ;;  %v226_v13 = vld [vmem:[#allocation5 + $0x58] sm:$0xff]  ;;  %v225_v14 = vld [vmem:[#allocation5 + $0x50] sm:$0xff]  ;;  %v224_v15 = vld [vmem:[#allocation5 + $0x48] sm:$0xff]  ;;  %s1735_s21 = scalar_lea.vmem %s1355_s1, 32  ;;  %p1740_p11 = scmp.lt.s32.totalorder %s1355_s1, %s1355_s1 }
  0x21   :  { %1497 = vmatprep.subr.mxu0 %v46_v3  ;;  %1506 = vmatprep.subr.mxu1 %v131_v7  ;;  %v223_v16 = vld [vmem:[#allocation5 + $0x40] sm:$0xff]  ;;  %v222_v17 = vld [vmem:[#allocation5 + $0x38] sm:$0xff]  ;;  %v1366_v18 = vld [vmem:[#allocation5 + $0x30] ss:$0 sm:$0xff]  ;;  %p1736_p10 = scmp.ne.s32.totalorder %s1355_s1, %s1735_s21  ;;  %p1741_p12 = scmp.lt.s32.totalorder %s1735_s21, %s1735_s21 }
  0x22   :  { %1498 = vmatpush3.msra.mxu0 %v46_v3  ;;  %1507 = vmatpush3.msra.mxu1 %v131_v7  ;;  %v1807_v30 = vld [vmem:[#allocation5 + $0x228] sm:$0x3]  ;;  %v394_v31 = vld [vmem:[#allocation5 + $0xb0] sm:$0xff]  ;;  %v392_v33 = vld [vmem:[#allocation5 + $0xa0] sm:$0xff] }
  0x23   :  { %1499 = vmatprep.subr.mxu0 %v45_v4  ;;  %1511 = vmatprep.subr.mxu1 %v229_v8  ;;  %v393_v32 = vld [vmem:[#allocation5 + $0xa8] sm:$0xff]  ;;  %v391_v34 = vld [vmem:[#allocation5 + $0x98] sm:$0xff]  ;;  %v390_v35 = vld [vmem:[#allocation5 + $0x90] sm:$0xff]  ;;  %p1742_p13 = por %p1741_p12, %p1740_p11 }
  0x24   :  { %1500 = vmatpush3.msra.mxu0 %v45_v4  ;;  %v389_v36 = vld [vmem:[#allocation5 + $0x88] sm:$0xff]  ;;  %v388_v37 = vld [vmem:[#allocation5 + $0x80] sm:$0xff]  ;;  %v387_v38 = vld [vmem:[#allocation5 + $0x78] sm:$0xff] }
  0x25   :  { %1502 = vmatmul.mubr.msk.f32.vlgmr.msra.gmra.mxu0 %vm49_vm0, %v44_v5  ;;  %1530 = vmatprep.subr.mxu0 %v1765_v25  ;;  %v1825_v41 = vld [vmem:[#allocation5 + $0x230] sm:$0xff]  ;;  %v1829_v48 = vld [vmem:[#allocation5 + $0x238] sm:$0xff]  ;;  %v568_v50 = vld [vmem:[#allocation5 + $0xe8] sm:$0xff]  ;;  %p1743_p0 = pnand %p1742_p13, %p1736_p10 }
  0x26   :  { %1534 = vmatprep.mubr.msk.f32.mxu0 %vm1766_vm3, %v1765_v25  ;;  %v569_v49 = vld [vmem:[#allocation5 + $0xf0] sm:$0xff]  ;;  %v567_v51 = vld [vmem:[#allocation5 + $0xe0] sm:$0xff]  ;;  %v566_v52 = vld [vmem:[#allocation5 + $0xd8] sm:$0xff] }
  0x27   :  { %v565_v53 = vld [vmem:[#allocation5 + $0xd0] sm:$0xff]  ;;  %v564_v54 = vld [vmem:[#allocation5 + $0xc8] sm:$0xff]  ;;  %v563_v55 = vld [vmem:[#allocation5 + $0xc0] sm:$0xff] }
  0x28   :  { %v562_v56 = vld [vmem:[#allocation5 + $0xb8] sm:$0xff]  ;;  %v658_v62 = vld [vmem:[#allocation5 + $0x110] sm:$0xff]  ;;  %v657_v63 = vld [vmem:[#allocation5 + $0x108] sm:$0xff] }
  0x29   :  { %v659_v57 = vld [vmem:[#allocation5 + $0x118] sm:$0xff]  ;;  %v656_v0 = vld [vmem:[#allocation5 + $0x100] sm:$0xff] }
  0x2a   :  { %v755_v1 = vld [vmem:[#allocation5 + $0x160] sm:$0xff]  ;;  %v1377_v3 = vld [vmem:[#allocation5 + $0xf8] ss:$0 sm:$0xff] }
  0x2b   :  { %v754_v7 = vld [vmem:[#allocation5 + $0x158] sm:$0xff] }
  0xe5   :  { %v1503_v9 = vpop.f32.mrf.mxu0 }
  0xe7   :  { %v122_v10 = vpop.f32.mrf.mxu0 }
  0xe8   :  { %1508 = vmatprep.mubr.msk.f32.mxu1 %vm138_vm1, %v122_v10  ;;  %v751_v10 = vld [vmem:[#allocation5 + $0x140] sm:$0xff] }
  0xe9   :  { %1509 = vmatmul.mubr.msk.f32.vlgmr.msra.gmra.mxu1 %vm138_vm1, %v1503_v9  ;;  %v752_v9 = vld [vmem:[#allocation5 + $0x148] sm:$0xff] }
  0xea   :  { %1512 = vmatpush3.msra.mxu1 %v229_v8  ;;  %v753_v8 = vld [vmem:[#allocation5 + $0x150] sm:$0xff] }
  0xeb   :  { %1513 = vmatprep.subr.mxu1 %v228_v11 }
  0xec   :  { %1514 = vmatpush3.msra.mxu1 %v228_v11  ;;  %v750_v11 = vld [vmem:[#allocation5 + $0x138] sm:$0xff] }
  0xed   :  { %1515 = vmatprep.subr.mxu1 %v227_v12 }
  0xee   :  { %1516 = vmatpush3.msra.mxu1 %v227_v12  ;;  %v749_v12 = vld [vmem:[#allocation5 + $0x130] sm:$0xff] }
  0xef   :  { %1517 = vmatprep.subr.mxu1 %v226_v13 }
  0xf0   :  { %1518 = vmatpush3.msra.mxu1 %v226_v13  ;;  %v748_v13 = vld [vmem:[#allocation5 + $0x128] sm:$0xff] }
  0xf1   :  { %1519 = vmatprep.subr.mxu1 %v225_v14 }
  0xf2   :  { %1520 = vmatpush3.msra.mxu1 %v225_v14  ;;  %v1380_v14 = vld [vmem:[#allocation5 + $0x120] ss:$0 sm:$0xff] }
  0xf3   :  { %1521 = vmatprep.subr.mxu1 %v224_v15 }
  0xf4   :  { %1522 = vmatpush3.msra.mxu1 %v224_v15 }
  0xf5   :  { %1523 = vmatprep.subr.mxu1 %v223_v16 }
  0xf6   :  { %1524 = vmatpush3.msra.mxu1 %v223_v16 }
  0xf7   :  { %1525 = vmatprep.subr.mxu1 %v222_v17 }
  0xf8   :  { %1526 = vmatpush3.msra.mxu1 %v222_v17 }
 0x1a9   :  { %v1510_v19 = vpop.f32.mrf.mxu1 }
 0x1aa   :  { %v217_v20 = vadd.f32 %v1510_v19, %v1366_v18 }
 0x1ab   :  { %v211_v21 = vpop.f32.mrf.mxu1 }
 0x1ac   :  { %v212_v22 = vadd.f32 %v1366_v18, %v211_v21  ;;  %v221_v24 = vmax.f32 %v217_v20, 0.0 }
 0x1ae   :  { %v220_v23 = vmax.f32 %v212_v22, 0.0 }
 0x1b0   :  { %1527 = vmatprep.mubr.msk.f32.mxu1 %vm230_vm2, %v220_v23 }
 0x1b1   :  { %1528 = vmatmul.mubr.msk.f32.vlgmr.msra.gmra.mxu1 %vm230_vm2, %v221_v24 }
 0x1b2   :  { %1558 = vmatprep.mubr.msk.f32.mxu1 %vm474_vm4, %v1825_v41 }
 0x271   :  { %v1799_v26 = vpop.f32.mrf.mxu1 }
 0x272   :  { %v313_v27 = vmax.f32 %v1799_v26, 0.0  ;;  %v916_v26 = vld [vmem:[#allocation5 + $0x1a0] sm:$0xff] }
 0x273   :  { %v1802_v28 = vpop.f32.mrf.mxu1 }
 0x274   :  { %v312_v29 = vmax.f32 %v1802_v28, 0.0  ;;  %1531 = vmatpush3.msra.mxu0 %v313_v27  ;;  %v914_v28 = vld [vmem:[#allocation5 + $0x190] sm:$0xff] }
 0x275   :  { %1532 = vmatprep.subr.mxu0 %v1765_v25 }
 0x276   :  { %1533 = vmatpush3.msra.mxu0 %v312_v29 }
 0x277   :  { %1535 = vmatmul.mubr.msk.f32.vlgmr.msra.gmra.mxu0 %vm138_vm1, %v1807_v30  ;;  %1537 = vmatprep.subr.mxu0 %v1765_v25 }
 0x278   :  { %1538 = vmatpush3.msra.mxu0 %v394_v31  ;;  %1553 = vmatprep.mubr.msk.f32.mxu0 %vm1766_vm3, %v1765_v25  ;;  %v912_v31 = vld [vmem:[#allocation5 + $0x180] sm:$0xff] }
 0x279   :  { %1539 = vmatprep.subr.mxu0 %v1765_v25 }
 0x27a   :  { %1540 = vmatpush3.msra.mxu0 %v393_v32  ;;  %v911_v32 = vld [vmem:[#allocation5 + $0x178] sm:$0xff] }
 0x27b   :  { %1541 = vmatprep.subr.mxu0 %v1765_v25 }
 0x27c   :  { %1542 = vmatpush3.msra.mxu0 %v392_v33  ;;  %v910_v33 = vld [vmem:[#allocation5 + $0x170] sm:$0xff] }
 0x27d   :  { %1543 = vmatprep.subr.mxu0 %v1765_v25 }
 0x27e   :  { %1544 = vmatpush3.msra.mxu0 %v391_v34  ;;  %v909_v34 = vld [vmem:[#allocation5 + $0x168] sm:$0xff] }
 0x27f   :  { %1545 = vmatprep.subr.mxu0 %v1765_v25 }
 0x280   :  { %1546 = vmatpush3.msra.mxu0 %v390_v35 }
 0x281   :  { %1547 = vmatprep.subr.mxu0 %v1765_v25 }
 0x282   :  { %1548 = vmatpush3.msra.mxu0 %v389_v36 }
 0x283   :  { %1549 = vmatprep.subr.mxu0 %v1765_v25 }
 0x284   :  { %1550 = vmatpush3.msra.mxu0 %v388_v37 }
 0x285   :  { %1551 = vmatprep.subr.mxu0 %v1765_v25 }
 0x286   :  { %1552 = vmatpush3.msra.mxu0 %v387_v38 }
 0x287   :  { %1580 = vmatprep.subr.mxu0 %v659_v57 }
 0x337   :  { %v383_v39 = vpop.f32.mrf.mxu0 }
 0x338   :  { %1554 = vmatmul.mubr.msk.f32.vlgmr.msra.gmra.mxu0 %vm230_vm2, %v383_v39 }
 0x339   :  { %v1536_v40 = vpop.f32.mrf.mxu0  ;;  %1581 = vmatpush3.msra.mxu0 %v659_v57  ;;  %v1173_v57 = vld [vmem:[#allocation5 + $0x1f8] sm:$0xff] }
 0x33a   :  { %1582 = vmatprep.subr.mxu0 %v658_v62 }
 0x33b   :  { %1583 = vmatpush3.msra.mxu0 %v658_v62 }
 0x33c   :  { %1584 = vmatprep.subr.mxu0 %v657_v63 }
 0x33d   :  { %1585 = vmatpush3.msra.mxu0 %v657_v63 }
 0x33e   :  { %1586 = vmatprep.subr.mxu0 %v656_v0 }
 0x33f   :  { %1587 = vmatpush3.msra.mxu0 %v656_v0 }
 0x340   :  { %1591 = vmatprep.subr.mxu0 %v755_v1 }
 0x3f8   :  { %v464_v42 = vpop.f32.mrf.mxu0 }
 0x3f9   :  { %v1373_v43 = vmul.f32 -1.442695, %v464_v42 }
 0x3fa   :  { %v1555_v44 = vpop.f32.mrf.mxu0 }
 0x3fb   :  { %1687 = vpow2.f32 %v1373_v43  ;;  %v1083_v43 = vld [vmem:[#allocation5 + $0x1e0] sm:$0xff]  ;;  %v1082_v44 = vld [vmem:[#allocation5 + $0x1d8] sm:$0xff] }
 0x408   :  { %v1688_v45 = vpop.eup %1687 }
 0x409   :  { %v471_v46 = vadd.f32 1.0, %v1688_v45  ;;  %v1081_v45 = vld [vmem:[#allocation5 + $0x1d0] sm:$0xff] }
 0x40b   :  { %1689 = vrcp.f32 %v471_v46  ;;  %v1080_v46 = vld [vmem:[#allocation5 + $0x1c8] sm:$0xff] }
 0x418   :  { %v1690_v47 = vpop.eup %1689 }
 0x419   :  { %1556 = vmatprep.subr.msk.mxu1 %vm481_vm5, %v1690_v47 }
 0x41a   :  { %1557 = vmatpush3.msk.msra.mxu1 %vm481_vm5, %v1690_v47  ;;  %v1079_v47 = vld [vmem:[#allocation5 + $0x1c0] sm:$0xff] }
 0x41b   :  { %1559 = vmatmul.mubr.msk.f32.vlgmr.msra.gmra.mxu1 %vm474_vm4, %v1829_v48  ;;  %1561 = vmatprep.subr.mxu1 %v569_v49 }
 0x41c   :  { %1562 = vmatpush3.msra.mxu1 %v569_v49  ;;  %v1078_v49 = vld [vmem:[#allocation5 + $0x1b8] sm:$0xff] }
 0x41d   :  { %1563 = vmatprep.subr.mxu1 %v568_v50 }
 0x41e   :  { %1564 = vmatpush3.msra.mxu1 %v568_v50  ;;  %v1077_v50 = vld [vmem:[#allocation5 + $0x1b0] sm:$0xff] }
 0x41f   :  { %1565 = vmatprep.subr.mxu1 %v567_v51 }
 0x420   :  { %1566 = vmatpush3.msra.mxu1 %v567_v51 }
 0x421   :  { %1567 = vmatprep.subr.mxu1 %v566_v52 }
 0x422   :  { %1568 = vmatpush3.msra.mxu1 %v566_v52 }
 0x423   :  { %1569 = vmatprep.subr.mxu1 %v565_v53 }
 0x424   :  { %1570 = vmatpush3.msra.mxu1 %v565_v53 }
 0x425   :  { %1571 = vmatprep.subr.mxu1 %v564_v54 }
 0x426   :  { %1572 = vmatpush3.msra.mxu1 %v564_v54 }
 0x427   :  { %1573 = vmatprep.subr.mxu1 %v563_v55 }
 0x428   :  { %1574 = vmatpush3.msra.mxu1 %v563_v55  ;;  %v1175_v55 = vld [vmem:[#allocation5 + $0x208] sm:$0xff] }
 0x429   :  { %1575 = vmatprep.subr.mxu1 %v562_v56 }
 0x42a   :  { %1576 = vmatpush3.msra.mxu1 %v562_v56  ;;  %v1174_v56 = vld [vmem:[#allocation5 + $0x200] sm:$0xff] }
 0x42b   :  { %1610 = vmatprep.subr.mxu1 %v1765_v25 }
 0x4db   :  { %v1560_v58 = vpop.f32.mrf.mxu1 }
 0x4dc   :  { %v561_v61 = vmul.f32 %v1560_v58, %v313_v27  ;;  %v915_v27 = vld [vmem:[#allocation5 + $0x198] sm:$0xff]  ;;  %v1172_v58 = vld [vmem:[#allocation5 + $0x1f0] sm:$0xff] }
 0x4dd   :  { %v551_v59 = vpop.f32.mrf.mxu1 }
 0x4de   :  { %v560_v60 = vmul.f32 %v551_v59, %v312_v29  ;;  %v913_v29 = vld [vmem:[#allocation5 + $0x188] sm:$0xff]  ;;  %v1767_v59 = vmov 0  }
 0x4df   :  { %1686 = vset.pattern.permute.xlu0 %v1767_v59 }
 0x4e0   :  { %1577 = vmatprep.mubr.msk.f32.mxu1 %vm230_vm2, %v560_v60  ;;  %v1391_v60 = vld [vmem:[#allocation5 + $0x1e8] ss:$0 sm:$0xff] }
 0x4e1   :  { %1578 = vmatmul.mubr.msk.f32.vlgmr.msra.gmra.mxu1 %vm230_vm2, %v561_v61 }
 0x4e2   :  { %1614 = vmatprep.mubr.msk.f32.mxu1 %vm1766_vm3, %v1765_v25 }
 0x5a1   :  { %v1579_v2 = vpop.f32.mrf.mxu1 }
 0x5a2   :  { %v1846_v6 = vadd.f32 %v1579_v2, %v1377_v3 }
 0x5a3   :  { %v647_v4 = vpop.f32.mrf.mxu1 }
 0x5a4   :  { %v1844_v5 = vadd.f32 %v1377_v3, %v647_v4 }
 0x5a6   :  { %1588 = vmatprep.mubr.msk.f32.mxu0 %vm49_vm0, %v1844_v5 }
 0x5a7   :  { %1589 = vmatmul.mubr.msk.f32.vlgmr.msra.gmra.mxu0 %vm49_vm0, %v1846_v6 }
 0x5a8   :  { %1592 = vmatpush3.msra.mxu0 %v755_v1 }
 0x5a9   :  { %1593 = vmatprep.subr.mxu0 %v754_v7 }
 0x5aa   :  { %1594 = vmatpush3.msra.mxu0 %v754_v7  ;;  %v1258_v7 = vld [vmem:[#allocation5 + $0x218] sm:$0xff] }
 0x5ab   :  { %1595 = vmatprep.subr.mxu0 %v753_v8 }
 0x5ac   :  { %1596 = vmatpush3.msra.mxu0 %v753_v8 }
 0x5ad   :  { %1597 = vmatprep.subr.mxu0 %v752_v9 }
 0x5ae   :  { %1598 = vmatpush3.msra.mxu0 %v752_v9 }
 0x5af   :  { %1599 = vmatprep.subr.mxu0 %v751_v10 }
 0x5b0   :  { %1600 = vmatpush3.msra.mxu0 %v751_v10  ;;  %v1257_v10 = vld [vmem:[#allocation5 + $0x210] sm:$0xff] }
 0x5b1   :  { %1601 = vmatprep.subr.mxu0 %v750_v11 }
 0x5b2   :  { %1602 = vmatpush3.msra.mxu0 %v750_v11 }
 0x5b3   :  { %1603 = vmatprep.subr.mxu0 %v749_v12 }
 0x5b4   :  { %1604 = vmatpush3.msra.mxu0 %v749_v12 }
 0x5b5   :  { %1605 = vmatprep.subr.mxu0 %v748_v13 }
 0x5b6   :  { %1606 = vmatpush3.msra.mxu0 %v748_v13 }
 0x667   :  { %v1590_v15 = vpop.f32.mrf.mxu0 }
 0x668   :  { %v743_v16 = vadd.f32 %v1590_v15, %v1380_v14 }
 0x669   :  { %v737_v17 = vpop.f32.mrf.mxu0 }
 0x66a   :  { %v738_v18 = vadd.f32 %v1380_v14, %v737_v17  ;;  %v747_v20 = vmax.f32 %v743_v16, 0.0 }
 0x66c   :  { %v746_v19 = vmax.f32 %v738_v18, 0.0 }
 0x66e   :  { %1607 = vmatprep.mubr.msk.f32.mxu0 %vm230_vm2, %v746_v19 }
 0x66f   :  { %1608 = vmatmul.mubr.msk.f32.vlgmr.msra.gmra.mxu0 %vm230_vm2, %v747_v20 }
 0x670   :  { %1638 = vmatprep.mubr.msk.f32.mxu0 %vm474_vm4, %v1825_v41 }
 0x72f   :  { %v1856_v21 = vpop.f32.mrf.mxu0 }
 0x730   :  { %v838_v22 = vmax.f32 %v1856_v21, 0.0 }
 0x731   :  { %v1859_v23 = vpop.f32.mrf.mxu0 }
 0x732   :  { %v837_v24 = vmax.f32 %v1859_v23, 0.0  ;;  %1611 = vmatpush3.msra.mxu1 %v838_v22 }
 0x733   :  { %1612 = vmatprep.subr.mxu1 %v1765_v25 }
 0x734   :  { %1613 = vmatpush3.msra.mxu1 %v837_v24 }
 0x735   :  { %1615 = vmatmul.mubr.msk.f32.vlgmr.msra.gmra.mxu1 %vm138_vm1, %v1807_v30  ;;  %1617 = vmatprep.subr.mxu1 %v1765_v25 }
 0x736   :  { %1618 = vmatpush3.msra.mxu1 %v916_v26  ;;  %1633 = vmatprep.mubr.msk.f32.mxu1 %vm1766_vm3, %v1765_v25 }
 0x737   :  { %1619 = vmatprep.subr.mxu1 %v1765_v25 }
 0x738   :  { %1620 = vmatpush3.msra.mxu1 %v915_v27 }
 0x739   :  { %1621 = vmatprep.subr.mxu1 %v1765_v25 }
 0x73a   :  { %1622 = vmatpush3.msra.mxu1 %v914_v28 }
 0x73b   :  { %1623 = vmatprep.subr.mxu1 %v1765_v25 }
 0x73c   :  { %1624 = vmatpush3.msra.mxu1 %v913_v29 }
 0x73d   :  { %1625 = vmatprep.subr.mxu1 %v1765_v25 }
 0x73e   :  { %1626 = vmatpush3.msra.mxu1 %v912_v31 }
 0x73f   :  { %1627 = vmatprep.subr.mxu1 %v1765_v25 }
 0x740   :  { %1628 = vmatpush3.msra.mxu1 %v911_v32 }
 0x741   :  { %1629 = vmatprep.subr.mxu1 %v1765_v25 }
 0x742   :  { %1630 = vmatpush3.msra.mxu1 %v910_v33 }
 0x743   :  { %1631 = vmatprep.subr.mxu1 %v1765_v25 }
 0x744   :  { %1632 = vmatpush3.msra.mxu1 %v909_v34 }
 0x745   :  { %1660 = vmatprep.subr.mxu1 %v1175_v55 }
 0x7f5   :  { %v905_v35 = vpop.f32.mrf.mxu1 }
 0x7f6   :  { %1634 = vmatmul.mubr.msk.f32.vlgmr.msra.gmra.mxu1 %vm230_vm2, %v905_v35 }
 0x7f7   :  { %v1616_v36 = vpop.f32.mrf.mxu1  ;;  %1661 = vmatpush3.msra.mxu1 %v1175_v55 }
 0x7f8   :  { %1662 = vmatprep.subr.mxu1 %v1174_v56 }
 0x7f9   :  { %1663 = vmatpush3.msra.mxu1 %v1174_v56 }
 0x7fa   :  { %1664 = vmatprep.subr.mxu1 %v1173_v57 }
 0x7fb   :  { %1665 = vmatpush3.msra.mxu1 %v1173_v57 }
 0x7fc   :  { %1666 = vmatprep.subr.mxu1 %v1172_v58 }
 0x7fd   :  { %1667 = vmatpush3.msra.mxu1 %v1172_v58 }
 0x7fe   :  { %1671 = vmatprep.subr.mxu1 %v1765_v25 }
 0x8b6   :  { %v986_v37 = vpop.f32.mrf.mxu1 }
 0x8b7   :  { %v1387_v38 = vmul.f32 -1.442695, %v986_v37 }
 0x8b8   :  { %v1635_v39 = vpop.f32.mrf.mxu1 }
 0x8b9   :  { %1691 = vpow2.f32 %v1387_v38 }
 0x8c6   :  { %v1692_v40 = vpop.eup %1691 }
 0x8c7   :  { %v993_v41 = vadd.f32 1.0, %v1692_v40 }
 0x8c9   :  { %1693 = vrcp.f32 %v993_v41 }
 0x8d6   :  { %v1694_v42 = vpop.eup %1693 }
 0x8d7   :  { %1636 = vmatprep.subr.msk.mxu0 %vm481_vm5, %v1694_v42 }
 0x8d8   :  { %1637 = vmatpush3.msk.msra.mxu0 %vm481_vm5, %v1694_v42 }
 0x8d9   :  { %1639 = vmatmul.mubr.msk.f32.vlgmr.msra.gmra.mxu0 %vm474_vm4, %v1829_v48  ;;  %1641 = vmatprep.subr.mxu0 %v1083_v43  ;;  %v1076_v48 = vld [vmem:[#allocation5 + $0x1a8] sm:$0xff] }
 0x8da   :  { %1642 = vmatpush3.msra.mxu0 %v1083_v43 }
 0x8db   :  { %1643 = vmatprep.subr.mxu0 %v1082_v44 }
 0x8dc   :  { %1644 = vmatpush3.msra.mxu0 %v1082_v44 }
 0x8dd   :  { %1645 = vmatprep.subr.mxu0 %v1081_v45 }
 0x8de   :  { %1646 = vmatpush3.msra.mxu0 %v1081_v45 }
 0x8df   :  { %1647 = vmatprep.subr.mxu0 %v1080_v46 }
 0x8e0   :  { %1648 = vmatpush3.msra.mxu0 %v1080_v46 }
 0x8e1   :  { %1649 = vmatprep.subr.mxu0 %v1079_v47 }
 0x8e2   :  { %1650 = vmatpush3.msra.mxu0 %v1079_v47 }
 0x8e3   :  { %1651 = vmatprep.subr.mxu0 %v1078_v49 }
 0x8e4   :  { %1652 = vmatpush3.msra.mxu0 %v1078_v49 }
 0x8e5   :  { %1653 = vmatprep.subr.mxu0 %v1077_v50 }
 0x8e6   :  { %1654 = vmatpush3.msra.mxu0 %v1077_v50 }
 0x8e7   :  { %1655 = vmatprep.subr.mxu0 %v1076_v48 }
 0x8e8   :  { %1656 = vmatpush3.msra.mxu0 %v1076_v48 }
 0x999   :  { %v1640_v51 = vpop.f32.mrf.mxu0 }
 0x99a   :  { %v1075_v54 = vmul.f32 %v1640_v51, %v838_v22 }
 0x99b   :  { %v1065_v52 = vpop.f32.mrf.mxu0 }
 0x99c   :  { %v1074_v53 = vmul.f32 %v1065_v52, %v837_v24 }
 0x99e   :  { %1657 = vmatprep.mubr.msk.f32.mxu0 %vm230_vm2, %v1074_v53 }
 0x99f   :  { %1658 = vmatmul.mubr.msk.f32.vlgmr.msra.gmra.mxu0 %vm230_vm2, %v1075_v54 }
 0xa5f   :  { %v1659_v61 = vpop.f32.mrf.mxu0 }
 0xa60   :  { %v1167_v62 = vadd.f32 %v1659_v61, %v1391_v60 }
 0xa61   :  { %v1161_v63 = vpop.f32.mrf.mxu0 }
 0xa62   :  { %v1162_v0 = vadd.f32 %v1391_v60, %v1161_v63  ;;  %v1171_v2 = vadd.f32 %v1167_v62, %v1846_v6  ;;  %v1396_v6 = vld [vmem:[#allocation5 + $0x220] ss:$0 sm:$0xff] }
 0xa64   :  { %v1170_v1 = vadd.f32 %v1162_v0, %v1844_v5 }
 0xa66   :  { %1668 = vmatprep.mubr.msk.f32.mxu1 %vm49_vm0, %v1170_v1 }
 0xa67   :  { %1669 = vmatmul.mubr.msk.f32.vlgmr.msra.gmra.mxu1 %vm49_vm0, %v1171_v2 }
 0xa68   :  { %1675 = vmatprep.mubr.msk.f32.mxu1 %vm1766_vm3, %v1765_v25 }
 0xb27   :  { %v1670_v3 = vpop.f32.mrf.mxu1 }
 0xb28   :  { %1266 = vperm.xlu0 %1686, %v1670_v3  }
 0xb29   :  { %v1248_v4 = vpop.f32.mrf.mxu1 }
 0xb2c   :  { %1261 = vperm.xlu0 %1686, %v1248_v4  }
 0xba3   :  { %v1267_v8 = vpop.permute.xlu0 %1266 }
 0xba4   :  { %v1270_v9 = vmul.f32 %v1267_v8, %v1258_v7 }
 0xba6   :  { %1672 = vmatpush3.msra.mxu1 %v1270_v9 }
 0xba7   :  { %v1262_v11 = vpop.permute.xlu0 %1261  ;;  %1673 = vmatprep.subr.mxu1 %v1765_v25 }
 0xba8   :  { %v1269_v5 = vmul.f32 %v1262_v11, %v1257_v10 }
 0xbaa   :  { %1674 = vmatpush3.msra.mxu1 %v1269_v5 }
 0xbab   :  { %1676 = vmatmul.mubr.msk.f32.vlgmr.msra.gmra.mxu1 %vm138_vm1, %v1807_v30 }
 0xc6b   :  { %v1342_v12 = vpop.f32.mrf.mxu1 }
 0xc6c   :  { %v1343_v13 = vadd.f32 %v1396_v6, %v1342_v12 }
 0xc6d   :  { %v1677_v14 = vpop.f32.mrf.mxu1 }
 0xc6e   :  { %1347 = vst.msk [vmem:[#allocation7] sm:$0x3] %vm1346_vm6, %v1343_v13 }
 0xc6f   :  { %1746 = shalt.err (!%p1743_p0)
}
 0xc70   :  { %1357 = dma.vmem_to_hbm [thread:$0]  %s1355_s1, 32, %s1905_s2, [#allocation4]  }
 0xc71   :  { %1759 = dma.done.wait [#allocation4], 32  }
 0xc72   :  { %1760 = vsyncadd [#allocation4], 4294967264 }
 0xc73   :  { %1361 = vsyncpa [#allocation3], 1 }
 0xc74   :  { %1362 = vsyncpa [#allocation6], 1 }
 0xc75   :  { %1363 = vsyncpa [#allocation4], 1 }

</bundles_post_ra>
